<compile_context>
chip_gen: v5e
topology: v5e:2x2
jax: 0.10.0
libtpu: 0.0.40
codegen_flags: <defaults>
</compile_context>

<pallas_src>
import functools

import jax
import jax.numpy as jnp
from jax import lax
from jax.experimental import pallas as pl
from jax.experimental.pallas import tpu as pltpu

IGNORE_INDEX = -100


def _focal_loss_kernel(x_ref, t_ref, o_ref, *, gamma, n_rows):
    """One tile of rows: log-softmax, per-row target gather, focal modulation,
    then emit a lane-dense (1, 8, 128) partial [sum, count] block."""
    x = x_ref[...].astype(jnp.float32)          # (TN, C)
    tgt = t_ref[...]                            # (TN, 1) int32
    tile_rows = x.shape[0]

    # Row validity: ignore_index rows AND the ragged tail of the last tile
    # (Pallas edge-block padding contents are unspecified).
    row = (pl.program_id(0) * tile_rows
           + lax.broadcasted_iota(jnp.int32, (tile_rows, 1), 0))
    valid = (tgt != IGNORE_INDEX) & (row < n_rows)           # (TN, 1)

    # Numerically stable log-sum-exp along the class (lane) axis.
    # exp(x - m) is computed once and reused for the denominator.
    m = jnp.max(x, axis=1, keepdims=True)                    # (TN, 1)
    e = jnp.exp(x - m)                                       # (TN, C)
    lse = jnp.log(jnp.sum(e, axis=1, keepdims=True))         # (TN, 1)

    # Gather the target-class logit straight from x via a one-hot masked sum
    # (no dynamic lane gather on TPU); subtracting m per-row afterwards keeps
    # the gather off the max/subtract critical path. Focal modulation is then
    # applied per row: O(TN) transcendentals instead of O(TN*C).
    col = lax.broadcasted_iota(jnp.int32, x.shape, 1)        # (TN, C)
    onehot = col == tgt                                      # (TN, C)
    x_t = jnp.sum(jnp.where(onehot, x, 0.0), axis=1, keepdims=True)  # (TN, 1)
    logpt_t = (x_t - m) - lse                                # (TN, 1)
    pt_t = jnp.exp(logpt_t)                                  # (TN, 1)
    one_minus = 1.0 - pt_t

    # Integer gamma stays on the VALU (integer_pow); non-integer gamma pays
    # for a pow on a (TN, 1) column only, with a clamp so rounding of pt_t
    # slightly above 1 cannot produce (negative)**non-integer = NaN.
    if float(gamma) == int(gamma):
        mod = lax.integer_pow(one_minus, int(gamma))
    else:
        mod = jnp.maximum(one_minus, 0.0) ** jnp.float32(gamma)
    focal_t = mod * logpt_t                                  # (TN, 1)

    contrib = jnp.where(valid, -focal_t, 0.0)                # (TN, 1)
    part_sum = jnp.sum(contrib)                              # scalar per tile
    part_cnt = jnp.sum(valid.astype(jnp.float32))            # scalar per tile

    # Lane-dense partial output: [0, 0, 0] = sum, [0, 0, 1] = count, rest 0.
    sub = lax.broadcasted_iota(jnp.int32, o_ref.shape, 1)
    lane = lax.broadcasted_iota(jnp.int32, o_ref.shape, 2)
    o_ref[...] = jnp.where(
        (sub == 0) & (lane == 0), part_sum,
        jnp.where((sub == 0) & (lane == 1), part_cnt, 0.0))


def _round_up(x, m):
    return ((x + m - 1) // m) * m


def _sublane_align(dtype):
    """Sublane alignment for the row dimension: f32 -> 8, bf16 -> 16, i8 -> 32."""
    return max(8, 32 // jnp.dtype(dtype).itemsize)


def _vmem_budget_cap():
    """Generation-aware scoped-VMEM cap: ~48 MiB on 64 MiB/TC chips (v7x),
    ~96 MiB on 128 MiB chips (v5e/v6e). Falls back to the conservative cap."""
    try:
        cap = pltpu.get_tpu_info().vmem_capacity_bytes
    except Exception:
        cap = 64 << 20
    return (96 << 20) if cap >= (96 << 20) else (48 << 20)


def _pick_tile_n(n, c, itemsize, align, vmem_cap):
    """Rows per tile sized from a per-row VMEM estimate (double-buffered input
    tile + ~3 f32 intermediate tiles + double-buffered lane-padded int32
    targets), targeting ~60% of the scoped-VMEM cap and <= 16384 rows."""
    row_bytes = c * (2 * itemsize + 3 * 4) + 2 * 128 * 4
    rows = int(vmem_cap * 0.6) // row_bytes
    rows = max(align, min(rows, 16384))
    rows = (rows // align) * align

    n_al = _round_up(n, align)
    if rows >= n_al:
        if n_al <= align:
            return n_al                          # one minimal tile; can't split
        rows = _round_up(-(-n // 2), align)      # >=2 tiles keeps both v7x TCs busy
    # Rebalance so tiles are as even as possible (last tile runs ragged).
    num_tiles = -(-n // rows)
    return _round_up(-(-n // num_tiles), align)


def focal_loss(logits, targets, *, gamma=2, tile_n=None):
    """logits: [N, C] float (f32 or bf16), targets: [N] int. Returns scalar loss."""
    N, C = logits.shape
    itemsize = jnp.dtype(logits.dtype).itemsize
    align = _sublane_align(logits.dtype)
    vmem_cap = _vmem_budget_cap()

    if tile_n is None:
        tile_n = _pick_tile_n(N, C, itemsize, align, vmem_cap)
    else:
        tile_n = max(align, (tile_n // align) * align)
        tile_n = min(tile_n, _round_up(N, align))
    num_tiles = -(-N // tile_n)                  # ragged last tile handled in-kernel

    t2 = targets.astype(jnp.int32).reshape(N, 1)

    # VMEM budget: double-buffered input tiles + f32 intermediates + lane-padded
    # targets + slack, clamped to the generation-aware cap.
    in_tile = tile_n * C * itemsize
    f32_tile = tile_n * C * 4
    tgt_tile = tile_n * 128 * 4
    need = 2 * in_tile + 3 * f32_tile + 2 * tgt_tile + (1 << 20)
    vmem_limit = int(min(vmem_cap, max(32 << 20, need)))

    partials = pl.pallas_call(
        functools.partial(_focal_loss_kernel, gamma=gamma, n_rows=N),
        out_shape=jax.ShapeDtypeStruct((num_tiles, 8, 128), jnp.float32),
        grid_spec=pltpu.PrefetchScalarGridSpec(
            num_scalar_prefetch=0,
            grid=(num_tiles,),
            in_specs=[
                pl.BlockSpec((tile_n, C), lambda i: (i, 0)),
                pl.BlockSpec((tile_n, 1), lambda i: (i, 0)),
            ],
            out_specs=pl.BlockSpec((1, 8, 128), lambda i: (i, 0, 0)),
        ),
        compiler_params=pltpu.CompilerParams(
            dimension_semantics=("parallel",),   # tiles independent; 2-TC friendly
            vmem_limit_bytes=vmem_limit,
        ),
    )(logits, t2)

    num = jnp.sum(partials[:, 0, 0])
    den = jnp.sum(partials[:, 0, 1])
    return num / den


def focal_loss_ref(logits, targets, gamma=2):
    """Pure-JAX reference mirroring the PyTorch forward."""
    logpt = jax.nn.log_softmax(logits.astype(jnp.float32), axis=1)
    pt = jnp.exp(logpt)
    focal = ((1.0 - pt) ** gamma) * logpt
    valid = targets != IGNORE_INDEX
    safe_t = jnp.where(valid, targets, 0)
    picked = jnp.take_along_axis(focal, safe_t[:, None], axis=1)[:, 0]
    num = jnp.sum(jnp.where(valid, -picked, 0.0))
    den = jnp.sum(valid.astype(jnp.float32))
    return num / den


if __name__ == "__main__":
    # Test 1: small f32, ignore_index rows, auto tile sizing (2-tile split).
    N, C = 16, 32
    key = jax.random.PRNGKey(0)
    k1, k2 = jax.random.split(key)
    logits = jax.random.normal(k1, (N, C), dtype=jnp.float32)
    targets = jax.random.randint(k2, (N,), 0, C, dtype=jnp.int32)
    targets = targets.at[3].set(IGNORE_INDEX).at[10].set(IGNORE_INDEX)

    loss = jax.block_until_ready(focal_loss(logits, targets, gamma=2))
    ref = focal_loss_ref(logits, targets, gamma=2)
    assert jnp.allclose(loss, ref, atol=1e-5, rtol=1e-5), (loss, ref)

    # Test 2: bf16 logits, non-tile-multiple N (ragged last tile), non-128
    # multiple C, forced tile_n — exercises the no-pad ragged path end-to-end.
    N2, C2 = 300, 48
    k3, k4 = jax.random.split(k2)
    logits2 = jax.random.normal(k3, (N2, C2), dtype=jnp.float32).astype(jnp.bfloat16)
    targets2 = jax.random.randint(k4, (N2,), 0, C2, dtype=jnp.int32)
    targets2 = targets2.at[7].set(IGNORE_INDEX)
    loss2 = jax.block_until_ready(focal_loss(logits2, targets2, gamma=2, tile_n=128))
    ref2 = focal_loss_ref(logits2, targets2, gamma=2)
    assert jnp.allclose(loss2, ref2, atol=1e-4, rtol=1e-4), (loss2, ref2)

    print("KERNEL_OK")
</pallas_src>

<mosaic_0001>
module attributes {stable_mosaic.version = 11 : i64} {
  func.func @_focal_loss_kernel(%arg0: i32, %arg1: memref<8x32xf32, #tpu.memory_space<vmem>>, %arg2: memref<8x1xi32, #tpu.memory_space<vmem>>, %arg3: memref<1x8x128xf32, #tpu.memory_space<vmem>>) attributes {dimension_semantics = [#tpu.dimension_semantics<parallel>], iteration_bounds = array<i64: 2>, scalar_prefetch = 0 : i64, scratch_operands = 0 : i64, tpu.core_type = #tpu.core_type<tc>, window_params = [{transform_indices = @transform_0, window_bounds = array<i64: 8, 32>}, {transform_indices = @transform_1, window_bounds = array<i64: 8, 1>}, {transform_indices = @transform_2, window_bounds = array<i64: 1, 8, 128>}]} {
    %c0 = arith.constant 0 : index
    %c0_0 = arith.constant 0 : index
    %0 = vector.load %arg1[%c0, %c0_0] : memref<8x32xf32, #tpu.memory_space<vmem>>, vector<8x32xf32>
    %c0_1 = arith.constant 0 : index
    %c0_2 = arith.constant 0 : index
    %1 = vector.load %arg2[%c0_1, %c0_2] : memref<8x1xi32, #tpu.memory_space<vmem>>, vector<8x1xi32>
    %c8_i32 = arith.constant 8 : i32
    %2 = arith.muli %arg0, %c8_i32 : i32
    %3 = tpu.iota {dimensions = array<i32: 0>} : vector<8x1xi32>
    %4 = vector.broadcast %2 : i32 to vector<8x1xi32>
    %5 = arith.addi %4, %3 : vector<8x1xi32>
    %c-100_i32 = arith.constant -100 : i32
    %6 = vector.broadcast %c-100_i32 : i32 to vector<8x1xi32>
    %7 = arith.cmpi ne, %1, %6 : vector<8x1xi32>
    %c16_i32 = arith.constant 16 : i32
    %8 = vector.broadcast %c16_i32 : i32 to vector<8x1xi32>
    %9 = arith.cmpi slt, %5, %8 : vector<8x1xi32>
    %10 = arith.andi %7, %9 : vector<8x1xi1>
    %cst = arith.constant dense<0xFF800000> : vector<8xf32>
    %11 = vector.multi_reduction <maximumf>, %0, %cst [1] : vector<8x32xf32> to vector<8xf32>
    %12 = vector.shape_cast %11 : vector<8xf32> to vector<8x1xf32>
    %13 = vector.broadcast %12 : vector<8x1xf32> to vector<8x32xf32>
    %14 = arith.subf %0, %13 : vector<8x32xf32>
    %15 = math.exp %14 : vector<8x32xf32>
    %cst_3 = arith.constant dense<0.000000e+00> : vector<8xf32>
    %16 = vector.multi_reduction <add>, %15, %cst_3 [1] : vector<8x32xf32> to vector<8xf32>
    %17 = vector.shape_cast %16 : vector<8xf32> to vector<8x1xf32>
    %18 = math.log %17 : vector<8x1xf32>
    %19 = tpu.iota {dimensions = array<i32: 1>} : vector<8x32xi32>
    %20 = vector.broadcast %1 : vector<8x1xi32> to vector<8x32xi32>
    %21 = arith.cmpi eq, %19, %20 : vector<8x32xi32>
    %cst_4 = arith.constant 0.000000e+00 : f32
    %22 = vector.broadcast %cst_4 : f32 to vector<8x32xf32>
    %23 = arith.select %21, %0, %22 : vector<8x32xi1>, vector<8x32xf32>
    %cst_5 = arith.constant dense<0.000000e+00> : vector<8xf32>
    %24 = vector.multi_reduction <add>, %23, %cst_5 [1] : vector<8x32xf32> to vector<8xf32>
    %25 = vector.shape_cast %24 : vector<8xf32> to vector<8x1xf32>
    %26 = arith.subf %25, %12 : vector<8x1xf32>
    %27 = arith.subf %26, %18 : vector<8x1xf32>
    %28 = math.exp %27 : vector<8x1xf32>
    %cst_6 = arith.constant 1.000000e+00 : f32
    %29 = vector.broadcast %cst_6 : f32 to vector<8x1xf32>
    %30 = arith.subf %29, %28 : vector<8x1xf32>
    %31 = arith.mulf %30, %30 : vector<8x1xf32>
    %32 = arith.mulf %31, %27 : vector<8x1xf32>
    %cst_7 = arith.constant 0.000000e+00 : f32
    %33 = vector.broadcast %cst_7 : f32 to vector<8x1xf32>
    %34 = arith.subf %33, %32 : vector<8x1xf32>
    %cst_8 = arith.constant 0.000000e+00 : f32
    %35 = vector.broadcast %cst_8 : f32 to vector<8x1xf32>
    %36 = arith.select %10, %34, %35 : vector<8x1xi1>, vector<8x1xf32>
    %37 = vector.shape_cast %36 : vector<8x1xf32> to vector<1x8x1xf32>
    %cst_9 = arith.constant dense<0.000000e+00> : vector<1xf32>
    %38 = vector.multi_reduction <add>, %37, %cst_9 [1, 2] : vector<1x8x1xf32> to vector<1xf32>
    %39 = vector.shape_cast %38 : vector<1xf32> to vector<1x1x1xf32>
    %40 = vector.extract %39[0, 0, 0] : f32 from vector<1x1x1xf32>
    %41 = arith.extui %10 : vector<8x1xi1> to vector<8x1xi32>
    %42 = arith.sitofp %41 : vector<8x1xi32> to vector<8x1xf32>
    %43 = vector.shape_cast %42 : vector<8x1xf32> to vector<1x8x1xf32>
    %cst_10 = arith.constant dense<0.000000e+00> : vector<1xf32>
    %44 = vector.multi_reduction <add>, %43, %cst_10 [1, 2] : vector<1x8x1xf32> to vector<1xf32>
    %45 = vector.shape_cast %44 : vector<1xf32> to vector<1x1x1xf32>
    %46 = vector.extract %45[0, 0, 0] : f32 from vector<1x1x1xf32>
    %47 = tpu.iota {dimensions = array<i32: 1>} : vector<1x8x128xi32>
    %48 = tpu.iota {dimensions = array<i32: 2>} : vector<1x8x128xi32>
    %c0_i32 = arith.constant 0 : i32
    %49 = vector.broadcast %c0_i32 : i32 to vector<1x8x128xi32>
    %50 = arith.cmpi eq, %47, %49 : vector<1x8x128xi32>
    %c0_i32_11 = arith.constant 0 : i32
    %51 = vector.broadcast %c0_i32_11 : i32 to vector<1x8x128xi32>
    %52 = arith.cmpi eq, %48, %51 : vector<1x8x128xi32>
    %53 = arith.andi %50, %52 : vector<1x8x128xi1>
    %c0_i32_12 = arith.constant 0 : i32
    %54 = vector.broadcast %c0_i32_12 : i32 to vector<1x8x128xi32>
    %55 = arith.cmpi eq, %47, %54 : vector<1x8x128xi32>
    %c1_i32 = arith.constant 1 : i32
    %56 = vector.broadcast %c1_i32 : i32 to vector<1x8x128xi32>
    %57 = arith.cmpi eq, %48, %56 : vector<1x8x128xi32>
    %58 = arith.andi %55, %57 : vector<1x8x128xi1>
    %cst_13 = arith.constant 0.000000e+00 : f32
    %59 = vector.broadcast %46 : f32 to vector<1x8x128xf32>
    %60 = vector.broadcast %cst_13 : f32 to vector<1x8x128xf32>
    %61 = arith.select %58, %59, %60 : vector<1x8x128xi1>, vector<1x8x128xf32>
    %62 = vector.broadcast %40 : f32 to vector<1x8x128xf32>
    %63 = arith.select %53, %62, %61 : vector<1x8x128xi1>, vector<1x8x128xf32>
    %c0_14 = arith.constant 0 : index
    %c0_15 = arith.constant 0 : index
    %c0_16 = arith.constant 0 : index
    %64 = vector.load %arg3[%c0_14, %c0_15, %c0_16] : memref<1x8x128xf32, #tpu.memory_space<vmem>>, vector<1x8x128xf32>
    tpu.vector_store %arg3[%c0_14, %c0_15, %c0_16], %63 {strides = array<i32>} : memref<1x8x128xf32, #tpu.memory_space<vmem>>, vector<1x8x128xf32>,
    return
  }
  func.func @transform_0(%arg0: i32) -> (i32, i32) {
    %c0_i32 = arith.constant 0 : i32
    %c0_i32_0 = arith.constant 0 : i32
    return %arg0, %c0_i32 : i32, i32
  }
  func.func @transform_1(%arg0: i32) -> (i32, i32) {
    %c0_i32 = arith.constant 0 : i32
    %c0_i32_0 = arith.constant 0 : i32
    return %arg0, %c0_i32 : i32, i32
  }
  func.func @transform_2(%arg0: i32) -> (i32, i32, i32) {
    %c0_i32 = arith.constant 0 : i32
    %c0_i32_0 = arith.constant 0 : i32
    %c0_i32_1 = arith.constant 0 : i32
    return %arg0, %c0_i32, %c0_i32_0 : i32, i32, i32
  }
}

</mosaic_0001>

<bundles_post_ra>
// kernel: tpu_custom_call.1
= control target key start
LH: loop header
LB: loop body
LE: loop exit
PB: predicated region body
PF: predicated region fallthrough
CT: control target
= control target key end

     0   :  { %7 = vsyncpa [#allocation3], 0  ;;  %s563_s0 = inlined_call_operand.vmem [shape: f32[16,32], index: 0, kind: input, shape index: {}]   ;;  %s564_s1 = inlined_call_operand.vmem [shape: s32[16,1], index: 1, kind: input, shape index: {}]   ;;  %s565_s2 = inlined_call_operand.hbm [shape: f32[2,8,128], index: 2, kind: output, shape index: {}]  }
   0x1   :  { %9 = vsyncpa [#allocation3 + $0x1], 0  ;;  %s463_s9 = smov 0   ;;  %s465_s10 = smov 0  }
   0x2   :  { %s467_s11 = smov 0   ;;  %s469_s12 = smov 0  }
   0x3 LB: > { %s484_s13 = sadd.s32 4294967295, %s444_s12   ;;  %s317_s14 = sadd.s32 4294967294, %s444_s12   ;;  %s444_s12 = sphi %s469_s12, %s571_s12   ;;  %s440_s11 = sphi %s467_s11, %s570_s11   ;;  %s436_s10 = sphi %s465_s10, %s569_s10   ;;  %s432_s9 = sphi %s463_s9, %s568_s9  }
   0x4   : > { %s488_s15 = sadd.s32 1, %s444_s12   ;;  %s74_s16 = sadd.s32 1, %s440_s11 }
   0x5   : > { %s71_s17 = ssub.s32 %s444_s12, %s488_s15  ;;  %p84_p0 = scmp.ne.s32.totalorder %s440_s11, %s436_s10 }
   0x6   : > { %p72_p1 = scmp.eq.s32.totalorder %s71_s17, 0  ;;  %p85_p2 = scmp.eq.s32.totalorder %s484_s13, 1 }
   0x7   : > { %p90_p3 = scmp.ne.s32.totalorder %s436_s10, %s432_s9  ;;  %p91_p4 = scmp.eq.s32.totalorder %s317_s14, 1 }
   0x8   : > { %s499_s18 = scalar_select %p72_p1, %s440_s11, %s74_s16  }
   0x9   : > { %p501_p5 = por %p85_p2, %p84_p0  ;;  %p505_p6 = por %p91_p4, %p90_p3 }
   0xa   : > { %p320_p7 = scmp.ge.s32.totalorder %s444_s12, 1  ;;  %p123_p8 = scmp.lt.s32.totalorder %s444_s12, 3 }
   0xc   : > { %p124_p9 = pnand %p320_p7, %p123_p8 }
   0xd   : > { %p148_p10 = scmp.lt.s32.totalorder (!%p124_p9), %s484_s13, 1  ;;  %s324_s29 = sshll.u32 (!%p124_p9), %s484_s13, 3 }
   0xe   : > { %127 = sbr.rel (%p124_p9) target bundleno = 494 (0x1ee), region = 28  ;;  %s145_s30 = sand.u32 (!%p124_p9), 1, %s436_s10  }
   0xf   : > { %s321_s3 = sshll.u32 (!%p124_p9), %s145_s30, 3  ;;  %s241_s6 = scalar_lea.hbm (!%p124_p9), %s565_s2, %s324_s29 }
  0x10   : > { %s147_s7 = scalar_lea.vmem (!%p124_p9), [#allocation2], %s321_s3  ;;  %s245_s16 = sshll.u32 (!%p124_p9), %s241_s6, 4  ;;  %s246_s16 = int_to_ptr.hbm [resolvable:$true] %s245_s16 }
  0x11   : > { %s243_s8 = sshll.u32 (!%p124_p9), %s147_s7, 4  ;;  %s244_s8 = int_to_ptr.vmem [resolvable:$true] %s243_s8 }
  0x13   : > { %v446_v0 = vmov 0   ;;  %s149_s21 = scalar_select %p148_p10, %s484_s13, 1  ;;  %vm166_vm0 = vcmask 261120   ;;  %v159_v9 = vlaneseq  ;;  %v161_v22 = vstv %s324_s29 }
  0x14   : > { %375 = vset.pattern.permute.xlu0 %v446_v0  ;;  %vm197_vm5 = vcmask 7168   ;;  %v447_v31 = vmov 0.0   ;;  %s231_s13 = scalar_lea.sflag [#allocation3], %s145_s30 }
  0x15   : > { %s322_s22 = sshll.u32 %s149_s21, 3  ;;  %v521_v10 = vand.u32 127, %v159_v9  ;;  %v160_v21 = vshrl.u32 %v159_v9, 7  ;;  %s396_s21 = sshra.s32 %s246_s16, 4  ;;  %s397_s21 = int_to_ptr.hbm [resolvable:$true] %s396_s21 }
  0x16   : > { %s151_s25 = scalar_lea.vmem %s563_s0, %s322_s22  ;;  %s155_s28 = scalar_lea.vmem %s564_s1, %s322_s22 }
  0x17   : > { %v156_v1 = vld [vmem:[%s151_s25] sm:$0xff]  ;;  %v162_v23 = vadd.s32 %v161_v22, %v160_v21  ;;  %vm220_vm6 = vcmp.eq.s32.totalorder %v160_v21, 0  ;;  %vm223_vm7 = vcmp.eq.s32.totalorder %v521_v10, 1  ;;  %vm221_vm8 = vcmp.eq.s32.totalorder %v521_v10, 0  ;;  %s398_s22 = scalar_lea.hbm %s397_s21, 8  ;;  %s402_s25 = scalar_lea.hbm %s565_s2, 16 }
  0x18   : > { %v167_v2 = vsel %vm166_vm0, %v156_v1, -inf  ;;  %v157_v3 = vld [vmem:[%s155_s28] sm:$0xff]  ;;  %vm224_vm9 = vmand %vm220_vm6, %vm223_vm7  ;;  %p399_p11 = scmp.ne.s32.totalorder %s397_s21, %s398_s22  ;;  %p403_p0 = scmp.lt.s32.totalorder %s397_s21, %s565_s2 }
  0x19   : > { %168 = vmax.xlane.f32.xlu0 %v167_v2  ;;  %vm163_vm2 = vcmp.ne.s32.totalorder %v157_v3, 4294967196  ;;  %vm164_vm3 = vcmp.lt.s32.totalorder %v162_v23, 16  ;;  %vm222_vm10 = vmand %vm220_vm6, %vm221_vm8  ;;  %p404_p1 = scmp.lt.s32.totalorder %s402_s25, %s398_s22 }
  0x1a   : > { %vm165_vm4 = vmand %vm163_vm2, %vm164_vm3  ;;  %p400_p12 = pnand %p399_p11, %p501_p5 }
  0x1b   : > { %v325_v32 = vsel %vm165_vm4, 1.0, %v447_v31  ;;  %p405_p2 = por %p404_p1, %p403_p0 }
  0x1c   : > { %v210_v33 = vsel %vm197_vm5, %v325_v32, 0.0  ;;  %p401_p13 = pneg %p400_p12 }
  0x1e   : > { %p406_p3 = pnand %p405_p2, %p401_p13 }
  0x2d   : > { %181 = vperm.xlu0 %375, %v157_v3  }
  0x8c   : > { %v169_v4 = vpop.xlane.xlu0 %168 }
  0x8d   : > { %v170_v5 = vsub.f32 %v156_v1, %v169_v4 }
  0x8f   : > { %v171_v6 = vmul.f32 1.442695, %v170_v5 }
  0x91   : > { %376 = vpow2.f32 %v171_v6 }
  0x97   : > { %v377_v7 = vpop.eup %376 }
  0x98   : > { %v173_v8 = vsel %vm166_vm0, %v377_v7, 0.0 }
  0x99   : > { %174 = vadd.xlane.f32.xlu1 %v173_v8 }
  0x9f   : > { %v182_v11 = vpop.permute.xlu0 %181 }
  0xa0   : > { %vm183_vm1 = vcmp.eq.s32.totalorder %v521_v10, %v182_v11 }
  0xa1   : > { %v184_v12 = vsel %vm183_vm1, %v156_v1, 0.0 }
  0xa2   : > { %v185_v13 = vsel %vm166_vm0, %v184_v12, 0.0 }
  0xa3   : > { %186 = vadd.xlane.f32.xlu1 %v185_v13 }
 0x10c   : > { %v175_v14 = vpop.xlane.xlu1 %174 }
 0x10d   : > { %378 = vlog2.f32 %v175_v14 }
 0x113   : > { %v379_v15 = vpop.eup %378 }
 0x114   : > { %v177_v17 = vmul.f32 0.6931472, %v379_v15 }
 0x116   : > { %v187_v16 = vpop.xlane.xlu1 %186 }
 0x117   : > { %v188_v18 = vsub.f32 %v187_v16, %v169_v4 }
 0x119   : > { %v189_v19 = vsub.f32 %v188_v18, %v177_v17 }
 0x11b   : > { %v190_v20 = vmul.f32 1.442695, %v189_v19 }
 0x11d   : > { %380 = vpow2.f32 %v190_v20 }
 0x123   : > { %v381_v24 = vpop.eup %380 }
 0x124   : > { %v192_v25 = vsub.f32 1.0, %v381_v24 }
 0x126   : > { %v193_v26 = vmul.f32 %v192_v25, %v192_v25 }
 0x128   : > { %v194_v27 = vmul.f32 %v193_v26, %v189_v19 }
 0x12a   : > { %v195_v28 = vsub.f32 0.0, %v194_v27 }
 0x12c   : > { %v196_v29 = vsel %vm165_vm4, %v195_v28, 0.0 }
 0x12d   : > { %v198_v30 = vsel %vm197_vm5, %v196_v29, 0.0 }
 0x12e   : > { %199 = vadd.xlane.f32.xlu2 %v198_v30 }
 0x136   : > { %211 = vadd.xlane.f32.xlu2 %v210_v33 }
 0x1a1   : > { %v200_v34 = vpop.xlane.xlu2 %199 }
 0x1a2   : > { %v201_v35 = vrot.slane %v200_v34, 4 }
 0x1a4   : > { %v202_v36 = vadd.f32 %v201_v35, %v200_v34 }
 0x1a6   : > { %v203_v37 = vrot.slane %v202_v36, 2 }
 0x1a8   : > { %v204_v38 = vadd.f32 %v203_v37, %v202_v36 }
 0x1a9   : > { %v212_v39 = vpop.xlane.xlu2 %211 }
 0x1aa   : > { %v213_v40 = vrot.slane %v212_v39, 4  ;;  %v205_v41 = vrot.slane %v204_v38, 1 }
 0x1ac   : > { %v214_v42 = vadd.f32 %v213_v40, %v212_v39  ;;  %v206_v43 = vadd.f32 %v205_v41, %v204_v38 }
 0x1ae   : > { %v215_v44 = vrot.slane %v214_v42, 2  ;;  %330 = vpush %v206_v43 }
 0x1b0   : > { %v216_v45 = vadd.f32 %v215_v44, %v214_v42 }
 0x1b2   : > { %v217_v46 = vrot.slane %v216_v45, 1 }
 0x1b4   : > { %v218_v47 = vadd.f32 %v217_v46, %v216_v45 }
 0x1b6   : > { %332 = vpush %v218_v47 }
 0x1df   : > { %s331_s14 = spop %330 }
 0x1e0   : > { %v227_v49 = vstv %s331_s14 }
 0x1e7   : > { %s333_s17 = spop %332 }
 0x1e8   : > { %v225_v48 = vstv %s333_s17 }
 0x1e9   : > { %v226_v50 = vsel %vm224_vm9, %v225_v48, 0.0 }
 0x1ea   : > { %v228_v51 = vsel %vm222_vm10, %v227_v49, %v226_v50 }
 0x1eb   : > { %229 = vst [vmem:[%s147_s7] sm:$0xff] %v228_v51 }
 0x1ec   : > { %409 = shalt.err (!%p406_p3)
}
 0x1ed   : > { %334 = dma.vmem_to_hbm [thread:$0]  (%p501_p5), %s244_s8, 128, %s246_s16, %s231_s13  }
 0x1ee PF: > { %p340_p4 = scmp.ge.s32.totalorder %s444_s12, 2  ;;  %s257_s28 = sand.u32 1, %s432_s9  }
 0x1ef   : > { %s258_s29 = scalar_lea.sflag [#allocation3], %s257_s28 }
 0x1f0   : > { %p337_p7 = pnand %p340_p4, %p505_p6 }
 0x1f2   : > { %p338_p8 = pneg %p337_p7 }
 0x1f4   : > { %427 = dma.done.wait (%p338_p8), %s258_s29, 128  }
 0x1f5   : > { %429 = vsyncadd (%p338_p8), %s258_s29, 4294967168  ;;  %p12_p9 = scmp.ge.s32.totalorder %s488_s15, 4   ;;  %s568_s9 = smov %s436_s10 }
 0x1f6   : > { %s569_s10 = smov %s440_s11  ;;  %s570_s11 = smov %s499_s18 }
 0x1f7   : > { %s571_s12 = smov %s488_s15  ;;  %14 = sbr.rel (!%p12_p9) target bundleno = 3 (0x3), region = 66 }
 0x1fc   :  { %264 = vsyncpa [#allocation3], 1 }
 0x1fd   :  { %266 = vsyncpa [#allocation3 + $0x1], 1 }

</bundles_post_ra>
